<compile_context>
chip_gen: v7x
topology: tpu7x:2x2x1
jax: 0.10.0
libtpu: 0.0.40
codegen_flags: <defaults>
</compile_context>

<pallas_src>
import jax
import jax.numpy as jnp
from jax.experimental import pallas as pl
from jax.experimental.pallas import tpu as pltpu

# ---- static problem sizes (from the module's example input / repeat args) ----
X_SHAPE = (1, 2, 3)                        # input shape
REPEATS = (1, 2, 3, 3)                     # torch repeat args
OUT_SHAPE = (1, 2, 6, 9)                   # (1*1, 1*2, 2*3, 3*3)
SRC_H, SRC_W = X_SHAPE[1], X_SHAPE[2]      # 2, 3
SRC_FLAT = SRC_H * SRC_W                   # 6
OUT_FLAT = OUT_SHAPE[1] * OUT_SHAPE[2] * OUT_SHAPE[3]   # 108


def repeat_kernel(x_ref, o_ref):
    """x_ref: (1, 6) in VMEM (lane-flat source); o_ref: (1, 108) in VMEM.

    Row-major flatten of the (1, 2, 6, 9) output over (c, h, w) is
      [R0, R1] * 6
    where Rk = src row k repeated 3x along lanes (w-repeat), the [R0,R1]
    pair repeated 3x is the h-repeat, and the extra 2x is the channel repeat
    of the size-1 source channel dim.  All twelve 9-lane slabs are identical
    copies of the 18-lane unit, so build it once and double it up.
    """
    src = x_ref[...]                                   # (1, 6), one vector load
    row0 = src[:, 0:3]                                 # (1, 3)  lane slice
    row1 = src[:, 3:6]                                 # (1, 3)  lane slice

    # 18-lane unit [R0, R1]  (w-repeat of both rows)
    r01 = jnp.concatenate([row0, row0, row0, row1, row1, row1], axis=1)  # (1, 18)

    # Replicate to 108 lanes by doubling: 18 -> 36 -> 72, then 72 + 36.
    r2 = jnp.concatenate([r01, r01], axis=1)           # (1, 36)
    r4 = jnp.concatenate([r2, r2], axis=1)             # (1, 72)
    o_ref[...] = jnp.concatenate([r4, r2], axis=1)     # (1, 108)


def repeat_longer_repeats(x):
    """x: (1, 2, 3) -> (1, 2, 6, 9), matching torch's x.repeat(1, 2, 3, 3).

    Dtype is preserved (torch.repeat preserves dtype).
    """
    assert x.shape == X_SHAPE
    # Row-major flatten (free bitcast): [x[0,0,0..2], x[0,1,0..2]]
    x_flat = x.reshape(1, SRC_FLAT)

    flat = pl.pallas_call(
        repeat_kernel,
        out_shape=jax.ShapeDtypeStruct((1, OUT_FLAT), x.dtype),
        in_specs=[pl.BlockSpec(memory_space=pltpu.MemorySpace.VMEM)],
        out_specs=pl.BlockSpec(memory_space=pltpu.MemorySpace.VMEM),
        cost_estimate=pl.CostEstimate(
            flops=0,
            transcendentals=0,
            bytes_accessed=(SRC_FLAT + OUT_FLAT) * x.dtype.itemsize,
        ),
    )(x_flat)

    # Lane-flat (1, 108) -> PyTorch NCHW-like (1, 2, 6, 9); reshape is wrapper-side.
    return flat.reshape(OUT_SHAPE)


if __name__ == "__main__":
    key = jax.random.PRNGKey(0)
    x = jax.random.normal(key, X_SHAPE, dtype=jnp.float32)

    out = repeat_longer_repeats(x)
    out = jax.block_until_ready(out)

    # Reference: jnp.tile has identical semantics to torch.repeat here
    # (reps longer than ndim prepend size-1 dims).  Pure data movement ->
    # exact equality, no tolerance.
    expected = jnp.tile(x, REPEATS)
    assert out.shape == OUT_SHAPE, out.shape
    assert out.dtype == x.dtype, out.dtype
    assert jnp.array_equal(out, expected), "mismatch vs jnp.tile reference"

    print("KERNEL_OK")
</pallas_src>

<mosaic_0001>
module attributes {stable_mosaic.version = 11 : i64} {
  func.func @repeat_kernel(%arg0: memref<1x6xf32, #tpu.memory_space<vmem>>, %arg1: memref<1x108xf32, #tpu.memory_space<vmem>>) attributes {dimension_semantics = [], scalar_prefetch = 0 : i64, scratch_operands = 0 : i64, tpu.core_type = #tpu.core_type<tc>} {
    %c0 = arith.constant 0 : index
    %c0_0 = arith.constant 0 : index
    %0 = vector.load %arg0[%c0, %c0_0] : memref<1x6xf32, #tpu.memory_space<vmem>>, vector<1x6xf32>
    %1 = vector.extract_strided_slice %0 {offsets = [0, 0], sizes = [1, 3], strides = [1, 1]} : vector<1x6xf32> to vector<1x3xf32>
    %2 = vector.extract_strided_slice %0 {offsets = [0, 3], sizes = [1, 3], strides = [1, 1]} : vector<1x6xf32> to vector<1x3xf32>
    %3 = tpu.concatenate %1, %1, %1, %2, %2, %2 in 1 : vector<1x3xf32>, vector<1x3xf32>, vector<1x3xf32>, vector<1x3xf32>, vector<1x3xf32>, vector<1x3xf32> -> vector<1x18xf32>
    %4 = tpu.concatenate %3, %3 in 1 : vector<1x18xf32>, vector<1x18xf32> -> vector<1x36xf32>
    %5 = tpu.concatenate %4, %4 in 1 : vector<1x36xf32>, vector<1x36xf32> -> vector<1x72xf32>
    %6 = tpu.concatenate %5, %4 in 1 : vector<1x72xf32>, vector<1x36xf32> -> vector<1x108xf32>
    %c0_1 = arith.constant 0 : index
    %c0_2 = arith.constant 0 : index
    %7 = vector.load %arg1[%c0_1, %c0_2] : memref<1x108xf32, #tpu.memory_space<vmem>>, vector<1x108xf32>
    tpu.vector_store %arg1[%c0_1, %c0_2], %6 {strides = array<i32>} : memref<1x108xf32, #tpu.memory_space<vmem>>, vector<1x108xf32>,
    return
  }
}

</mosaic_0001>

<bundles_post_ra>
// kernel: tpu_custom_call.1
= control target key start
LH: loop header
LB: loop body
LE: loop exit
PB: predicated region body
PF: predicated region fallthrough
CT: control target
= control target key end

     0   :  { %6 = vsyncpa [#allocation3], 0  ;;  %s183_s0 = inlined_call_operand.hbm [shape: f32[1,6], index: 0, kind: input, shape index: {}]   ;;  %s184_s1 = inlined_call_operand.hbm [shape: f32[1,108], index: 1, kind: output, shape index: {}]  }
   0x1   :  { %7 = vsyncpa [#allocation4], 0  ;;  %s140_s6 = smov [#allocation2]   ;;  %s92_s10 = scalar_lea.hbm %s183_s0, 16 }
   0x2   :  { %s14_s7 = sshll.u32 %s140_s6, 4  ;;  %p93_p0 = scmp.ne.s32.totalorder %s183_s0, %s92_s10  ;;  %s15_s7 = int_to_ptr.vmem [resolvable:$true] %s14_s7 }
   0x3   :  { %p96_p1 = scmp.lt.u32.totalorder %s92_s10, %s183_s0 }
   0x5   :  { %p98_p2 = pnand %p96_p1, %p93_p0 }
   0x7   :  { %101 = shalt.err (!%p98_p2)
}
   0x8   :  { %s102_s15 = scalar_lea.vmem %s15_s7, 16  ;;  %s106_s16 = scalar_lea.vmem %s15_s7, 32 }
   0x9   :  { %p103_p3 = scmp.ne.s32.totalorder %s15_s7, %s102_s15  ;;  %p107_p4 = scmp.lt.s32.totalorder %s15_s7, %s15_s7 }
   0xa   :  { %p108_p5 = scmp.lt.s32.totalorder %s106_s16, %s102_s15 }
   0xc   :  { %p109_p6 = por %p108_p5, %p107_p4 }
   0xe   :  { %p110_p7 = pnand %p109_p6, %p103_p3 }
  0x10   :  { %113 = shalt.err (!%p110_p7)
}
  0x11   :  { %17 = dma.hbm_to_vmem [thread:$0]  %s183_s0, 16, %s15_s7, [#allocation3]  }
  0x12   :  { %136 = dma.done.wait [#allocation3], 16  }
  0x13   :  { %137 = vsyncadd [#allocation3], 4294967280  ;;  %v23_v0 = vlaneseq  ;;  %v21_v3 = vld [vmem:[#allocation2] sm:$0x1]  ;;  %s141_s19 = smov 3   ;;  %s142_s20 = smov 9  }
  0x14   :  { %s143_s21 = smov 6   ;;  %s144_s22 = smov 12   ;;  %vm39_vm0 = vcmask 23552   ;;  %vm41_vm1 = vcmask 48128   ;;  %vm43_vm2 = vcmask 72704   ;;  %vm45_vm3 = vcmask 97280  }
  0x15   :  { %v24_v1 = vshrl.u32 %v23_v0, 7  ;;  %vm47_vm4 = vcmask 121856   ;;  %s145_s0 = smov 18   ;;  %vm53_vm5 = vcmask 146432   ;;  %s146_s23 = smov 72   ;;  %vm59_vm6 = vcmask 293888  }
  0x16   :  { %s147_s24 = smov 36   ;;  %s148_s25 = smov [#allocation5]   ;;  %vm64_vm7 = vcmask 588800   ;;  %vm66_vm8 = vcmask 876544  }
  0x17   :  { %v25_v2 = vsub.s32 0, %v24_v1  ;;  %s74_s26 = sshll.u32 %s148_s25, 4  ;;  %s75_s26 = int_to_ptr.vmem [resolvable:$true] %s74_s26 }
  0x18   :  { %s114_s27 = scalar_lea.vmem %s75_s26, 16  ;;  %s118_s28 = scalar_lea.vmem %s75_s26, 32 }
  0x19   :  { %v26_v4 = vrot.slane %v21_v3, %v25_v2  ;;  %p115_p8 = scmp.ne.s32.totalorder %s75_s26, %s114_s27  ;;  %p119_p9 = scmp.lt.s32.totalorder %s75_s26, %s75_s26 }
  0x1a   :  { %p120_p10 = scmp.lt.s32.totalorder %s118_s28, %s114_s27 }
  0x1b   :  { %27 = vrot.lane.b32.xlu0 %v26_v4, %s141_s19  ;;  %33 = vrot.lane.b32.xlu1 %v26_v4, %s142_s20 }
  0x1c   :  { %p121_p11 = por %p120_p10, %p119_p9 }
  0x1e   :  { %p122_p12 = pnand %p121_p11, %p115_p8 }
  0x1f   :  { %30 = vrot.lane.b32.xlu0 %v26_v4, %s143_s21  ;;  %36 = vrot.lane.b32.xlu1 %v26_v4, %s144_s22 }
  0x8d   :  { %v28_v5 = vpop.permute.xlu0 %27  ;;  %v34_v6 = vpop.permute.xlu1 %33 }
  0x8e   :  { %v40_v7 = vsel %vm39_vm0, %v21_v3, %v28_v5 }
  0x91   :  { %v31_v8 = vpop.permute.xlu0 %30  ;;  %v37_v10 = vpop.permute.xlu1 %36 }
  0x92   :  { %v42_v9 = vsel %vm41_vm1, %v40_v7, %v31_v8 }
  0x93   :  { %v44_v11 = vsel %vm43_vm2, %v42_v9, %v31_v8 }
  0x94   :  { %v46_v12 = vsel %vm45_vm3, %v44_v11, %v34_v6 }
  0x95   :  { %v48_v13 = vsel %vm47_vm4, %v46_v12, %v37_v10 }
  0x96   :  { %50 = vrot.lane.b32.xlu0 %v48_v13, %s145_s0 }
 0x108   :  { %v51_v14 = vpop.permute.xlu0 %50 }
 0x109   :  { %v54_v15 = vsel %vm53_vm5, %v48_v13, %v51_v14 }
 0x10a   :  { %61 = vrot.lane.b32.xlu0 %v54_v15, %s146_s23  ;;  %56 = vrot.lane.b32.xlu1 %v54_v15, %s147_s24 }
 0x17c   :  { %v62_v16 = vpop.permute.xlu0 %61  ;;  %v57_v17 = vpop.permute.xlu1 %56 }
 0x17d   :  { %v60_v18 = vsel %vm59_vm6, %v54_v15, %v57_v17 }
 0x17e   :  { %v65_v19 = vsel %vm64_vm7, %v60_v18, %v62_v16 }
 0x17f   :  { %67 = vst.msk [vmem:[#allocation5] sm:$0x1] %vm66_vm8, %v65_v19 }
 0x180   :  { %125 = shalt.err (!%p122_p12)
}
 0x181   :  { %s126_s2 = scalar_lea.hbm %s184_s1, 16 }
 0x182   :  { %p127_p13 = scmp.ne.s32.totalorder %s184_s1, %s126_s2  ;;  %p130_p0 = scmp.lt.u32.totalorder %s126_s2, %s184_s1 }
 0x184   :  { %p132_p1 = pnand %p130_p0, %p127_p13 }
 0x186   :  { %135 = shalt.err (!%p132_p1)
}
 0x187   :  { %77 = dma.vmem_to_hbm [thread:$0]  %s75_s26, 16, %s184_s1, [#allocation4]  }
 0x188   :  { %138 = dma.done.wait [#allocation4], 16  }
 0x189   :  { %139 = vsyncadd [#allocation4], 4294967280 }
 0x18a   :  { %81 = vsyncpa [#allocation3], 1 }
 0x18b   :  { %82 = vsyncpa [#allocation4], 1 }

</bundles_post_ra>
